<compile_context>
chip_gen: v6e
topology: v6e:2x2x1
jax: 0.10.0
libtpu: 0.0.40
codegen_flags: <defaults>
</compile_context>

<pallas_src>
import jax
import jax.numpy as jnp
from jax.experimental import pallas as pl
from jax.experimental.pallas import tpu as pltpu


_LANE = 128          # vreg lane width
_MAX_TILE_N = 512    # batch-tile width in lanes; tiny per-column footprint


def _round_up(x, m):
    return ((x + m - 1) // m) * m


def _mlp_kernel(x_ref, p_ref, o_ref):
    """x_ref: (8, TN) batch-on-lanes; p_ref: (10, 11) packed params; o_ref: (1, TN)."""
    x = x_ref[...]                       # (8, TN) f32
    p = p_ref[...]                       # (10, 11) f32, resident across grid steps
    w1 = p[:, 0:8]                       # (10, 8)  layer_1 weight (out, in)
    b1 = p[:, 8:9]                       # (10, 1)  layer_1 bias
    w23 = p[:, 9:10]                     # (10, 1)  folded (W3 @ W2).T column
    b23 = p[0:1, 10:11]                  # (1, 1)   folded bias W3 @ b2 + b3

    # layer_1 + ReLU on the MXU: (10, 8) @ (8, TN) -> (10, TN)
    h1 = jnp.dot(w1, x, preferred_element_type=jnp.float32) + b1
    h1 = jnp.maximum(h1, 0.0)

    # folded layer_2 @ layer_3: skinny 10->1 contraction on VPU + XLU
    # (avoids a second MXU round trip for K=10, M=1).
    out = jnp.sum(w23 * h1, axis=0, keepdims=True) + b23   # (1, TN)
    o_ref[...] = out.astype(o_ref.dtype)


def pack_params(params):
    """Fold layers 2+3 and pack all parameters into one (10, 11) f32 slab.

    Column layout: [0:8] = W1, [8] = b1, [9] = (W3 @ W2).T, row 0 of [10] = W3 @ b2 + b3.
    Folding is exact (no activation between layer_2 and layer_3), modulo fp reassociation.
    """
    w1, b1, w2, b2, w3, b3 = params          # PyTorch shapes: W (out, in), b (out,)
    w23_col = w2.T @ w3.T                    # (10, 1)
    b23 = w3 @ b2 + b3                       # (1,)
    p = jnp.zeros((10, 11), jnp.float32)
    p = p.at[:, 0:8].set(w1.astype(jnp.float32))
    p = p.at[:, 8].set(b1.astype(jnp.float32))
    p = p.at[:, 9].set(w23_col[:, 0].astype(jnp.float32))
    p = p.at[0, 10].set(b23[0].astype(jnp.float32))
    return p


def nba_player_define_model(x, packed_params):
    """Forward pass: x (N, 8) f32 -> (N, 1) f32 logits (matches PyTorch forward)."""
    n, f = x.shape
    assert f == 8, f

    # Batch-on-lanes layout (wrapper-side layout plumbing; lane-dense in the kernel).
    x_t = x.astype(jnp.float32).T            # (8, N)

    tile_n = min(_MAX_TILE_N, _round_up(n, _LANE))
    n_pad = _round_up(n, tile_n)
    if n_pad != n:
        x_t = jnp.pad(x_t, ((0, 0), (0, n_pad - n)))

    grid = (n_pad // tile_n,)
    out_t = pl.pallas_call(
        _mlp_kernel,
        out_shape=jax.ShapeDtypeStruct((1, n_pad), jnp.float32),
        grid_spec=pltpu.PrefetchScalarGridSpec(
            num_scalar_prefetch=0,
            grid=grid,
            in_specs=[
                pl.BlockSpec((8, tile_n), lambda i: (0, i)),   # batch tile (pipelined)
                pl.BlockSpec((10, 11), lambda i: (0, 0)),      # packed params, resident
            ],
            out_specs=pl.BlockSpec((1, tile_n), lambda i: (0, i)),
        ),
        compiler_params=pltpu.CompilerParams(
            # Batch axis is embarrassingly parallel -> v7x shards it across both
            # TensorCores; harmless on single-TC v5e/v6e.
            dimension_semantics=("parallel",),
        ),
    )(x_t, packed_params)

    return out_t[:, :n].reshape(n, 1)


def init_params(key):
    """Deterministic PyTorch-Linear-style init: W (out, in), b (out,)."""
    def linear(k, fan_in, fan_out):
        kw, kb = jax.random.split(k)
        bound = 1.0 / float(fan_in) ** 0.5
        w = jax.random.uniform(kw, (fan_out, fan_in), jnp.float32, -bound, bound)
        b = jax.random.uniform(kb, (fan_out,), jnp.float32, -bound, bound)
        return w, b

    k1, k2, k3 = jax.random.split(key, 3)
    w1, b1 = linear(k1, 8, 10)
    w2, b2 = linear(k2, 10, 10)
    w3, b3 = linear(k3, 10, 1)
    return w1, b1, w2, b2, w3, b3


def _reference(x, params):
    """Plain-JAX forward matching the PyTorch module exactly (no folding)."""
    w1, b1, w2, b2, w3, b3 = params
    h1 = jnp.maximum(x @ w1.T + b1, 0.0)
    h2 = h1 @ w2.T + b2
    return h2 @ w3.T + b3


if __name__ == "__main__":
    key = jax.random.PRNGKey(0)
    k_params, k_x1, k_x2 = jax.random.split(key, 3)

    params = init_params(k_params)
    packed = pack_params(params)

    # Small case: batch=8, in_features=8 (single grid step, padded to 128 lanes).
    x_small = jax.random.normal(k_x1, (8, 8), jnp.float32)
    out_small = jax.block_until_ready(nba_player_define_model(x_small, packed))
    assert out_small.shape == (8, 1), out_small.shape
    assert jnp.allclose(out_small, _reference(x_small, params), atol=1e-5, rtol=1e-4), \
        "mismatch vs reference (small batch)"

    # Non-aligned batch: exercises the multi-step grid + padding path.
    x_big = jax.random.normal(k_x2, (700, 8), jnp.float32)
    out_big = jax.block_until_ready(nba_player_define_model(x_big, packed))
    assert out_big.shape == (700, 1), out_big.shape
    assert jnp.allclose(out_big, _reference(x_big, params), atol=1e-5, rtol=1e-4), \
        "mismatch vs reference (large batch)"

    print("KERNEL_OK")
</pallas_src>

<mosaic_0001>
module attributes {stable_mosaic.version = 11 : i64} {
  func.func @_mlp_kernel(%arg0: i32, %arg1: memref<8x128xf32, #tpu.memory_space<vmem>>, %arg2: memref<10x11xf32, #tpu.memory_space<vmem>>, %arg3: memref<1x128xf32, #tpu.memory_space<vmem>>) attributes {dimension_semantics = [#tpu.dimension_semantics<parallel>], iteration_bounds = array<i64: 1>, scalar_prefetch = 0 : i64, scratch_operands = 0 : i64, tpu.core_type = #tpu.core_type<tc>, window_params = [{transform_indices = @transform_0, window_bounds = array<i64: 8, 128>}, {pipeline_mode = #tpu.pipeline_mode<synchronous>, transform_indices = @transform_1, window_bounds = array<i64: 10, 11>}, {transform_indices = @transform_2, window_bounds = array<i64: 1, 128>}]} {
    %c0 = arith.constant 0 : index
    %c0_0 = arith.constant 0 : index
    %0 = vector.load %arg1[%c0, %c0_0] : memref<8x128xf32, #tpu.memory_space<vmem>>, vector<8x128xf32>
    %c0_1 = arith.constant 0 : index
    %c0_2 = arith.constant 0 : index
    %1 = vector.load %arg2[%c0_1, %c0_2] : memref<10x11xf32, #tpu.memory_space<vmem>>, vector<10x11xf32>
    %2 = vector.extract_strided_slice %1 {offsets = [0, 0], sizes = [10, 8], strides = [1, 1]} : vector<10x11xf32> to vector<10x8xf32>
    %3 = vector.extract_strided_slice %1 {offsets = [0, 8], sizes = [10, 1], strides = [1, 1]} : vector<10x11xf32> to vector<10x1xf32>
    %4 = vector.extract_strided_slice %1 {offsets = [0, 9], sizes = [10, 1], strides = [1, 1]} : vector<10x11xf32> to vector<10x1xf32>
    %5 = vector.extract_strided_slice %1 {offsets = [0, 10], sizes = [1, 1], strides = [1, 1]} : vector<10x11xf32> to vector<1x1xf32>
    %cst = arith.constant dense<0.000000e+00> : vector<10x128xf32>
    %6 = tpu.matmul %2, %0, %cst {dimension_numbers = #tpu.dot_dimension_numbers<[1], [0], [0], [1], [0, 0, 1, 1], [], []>} : vector<10x8xf32>, vector<8x128xf32>, vector<10x128xf32> -> vector<10x128xf32>
    %7 = vector.broadcast %3 : vector<10x1xf32> to vector<10x128xf32>
    %8 = arith.addf %6, %7 : vector<10x128xf32>
    %cst_3 = arith.constant 0.000000e+00 : f32
    %9 = vector.broadcast %cst_3 : f32 to vector<10x128xf32>
    %10 = arith.maximumf %8, %9 : vector<10x128xf32>
    %11 = vector.broadcast %4 : vector<10x1xf32> to vector<10x128xf32>
    %12 = arith.mulf %11, %10 : vector<10x128xf32>
    %cst_4 = arith.constant dense<0.000000e+00> : vector<128xf32>
    %13 = vector.multi_reduction <add>, %12, %cst_4 [0] : vector<10x128xf32> to vector<128xf32>
    %14 = vector.shape_cast %13 : vector<128xf32> to vector<1x128xf32>
    %15 = vector.broadcast %5 : vector<1x1xf32> to vector<1x128xf32>
    %16 = arith.addf %14, %15 : vector<1x128xf32>
    %c0_5 = arith.constant 0 : index
    %c0_6 = arith.constant 0 : index
    %17 = vector.load %arg3[%c0_5, %c0_6] : memref<1x128xf32, #tpu.memory_space<vmem>>, vector<1x128xf32>
    tpu.vector_store %arg3[%c0_5, %c0_6], %16 {strides = array<i32>} : memref<1x128xf32, #tpu.memory_space<vmem>>, vector<1x128xf32>,
    return
  }
  func.func @transform_0(%arg0: i32) -> (i32, i32) {
    %c0_i32 = arith.constant 0 : i32
    %c0_i32_0 = arith.constant 0 : i32
    return %c0_i32, %arg0 : i32, i32
  }
  func.func @transform_1(%arg0: i32) -> (i32, i32) {
    %c0_i32 = arith.constant 0 : i32
    %c0_i32_0 = arith.constant 0 : i32
    %c0_i32_1 = arith.constant 0 : i32
    return %c0_i32, %c0_i32_0 : i32, i32
  }
  func.func @transform_2(%arg0: i32) -> (i32, i32) {
    %c0_i32 = arith.constant 0 : i32
    %c0_i32_0 = arith.constant 0 : i32
    return %c0_i32, %arg0 : i32, i32
  }
}

</mosaic_0001>

<bundles_post_ra>
// kernel: tpu_custom_call.1
= control target key start
LH: loop header
LB: loop body
LE: loop exit
PB: predicated region body
PF: predicated region fallthrough
CT: control target
= control target key end

     0   :  { %7 = vsyncpa [#allocation3], 0  ;;  %s293_s0 = inlined_call_operand.hbm [shape: f32[8,128], index: 0, kind: input, shape index: {}]   ;;  %s294_s1 = inlined_call_operand.hbm [shape: f32[10,11], index: 1, kind: input, shape index: {}]   ;;  %s295_s2 = inlined_call_operand.hbm [shape: f32[1,128], index: 2, kind: output, shape index: {}]  }
   0x1   :  { %8 = vsyncpa [#allocation6], 0 }
   0x2   :  { %9 = vsyncpa [#allocation4], 0  ;;  %s261_s9 = smov [#allocation2]   ;;  %s262_s11 = smov [#allocation5]  }
   0x3   :  { %s16_s10 = sshll.u32 %s261_s9, 4  ;;  %s25_s12 = sshll.u32 %s262_s11, 4  ;;  %s17_s10 = int_to_ptr.vmem [resolvable:$true] %s16_s10  ;;  %s26_s12 = int_to_ptr.vmem [resolvable:$true] %s25_s12 }
   0x4   :  { %s203_s13 = scalar_lea.vmem %s17_s10, 128  ;;  %p208_p1 = scmp.lt.s32.totalorder %s17_s10, %s17_s10 }
   0x5   :  { %p204_p0 = scmp.ne.s32.totalorder %s17_s10, %s203_s13  ;;  %p209_p2 = scmp.lt.s32.totalorder %s203_s13, %s203_s13 }
   0x7   :  { %p210_p3 = por %p209_p2, %p208_p1 }
   0x9   :  { %p211_p4 = pnand %p210_p3, %p204_p0 }
   0xb   :  { %214 = shalt.err (!%p211_p4)
}
   0xc   :  { %19 = dma.hbm_to_vmem [thread:$0]  %s293_s0, 128, %s17_s10, [#allocation3]  }
   0xd   :  { %s223_s16 = scalar_lea.vmem %s26_s12, 256  ;;  %p228_p6 = scmp.lt.s32.totalorder %s26_s12, %s26_s12 }
   0xe   :  { %p224_p5 = scmp.ne.s32.totalorder %s26_s12, %s223_s16  ;;  %p229_p7 = scmp.lt.s32.totalorder %s223_s16, %s223_s16 }
  0x10   :  { %p230_p8 = por %p229_p7, %p228_p6 }
  0x12   :  { %p231_p9 = pnand %p230_p8, %p224_p5 }
  0x14   :  { %234 = shalt.err (!%p231_p9)
}
  0x15   :  { %s263_s17 = smov 128   ;;  %s264_s18 = smov 8  }
  0x16   :  { %31 = dma.hbm_to_vmem [thread:$0]  %s294_s1, 256, %s26_s12, [#allocation6], %s263_s17, %s263_s17, %s264_s18  }
  0x17   :  { %255 = dma.done.wait [#allocation3], 128  }
  0x18   :  { %256 = vsyncadd [#allocation3], 4294967168 }
  0x19   :  { %257 = dma.done.wait [#allocation6], 256  }
  0x1a   :  { %258 = vsyncadd [#allocation6], 4294967040  ;;  %v265_v0 = vmov 8   ;;  %v266_v1 = vmov 9   ;;  %vm51_vm0 = vcmask 64512   ;;  %v38_v2 = vld [vmem:[#allocation2] sm:$0xff] }
  0x1b   :  { %192 = vset.pattern.permute.xlu0 %v265_v0  ;;  %193 = vset.pattern.permute.xlu1 %v266_v1  ;;  %v39_v3 = vld [vmem:[#allocation5] sm:$0xff]  ;;  %v40_v4 = vld [vmem:[#allocation5 + $0x8] sm:$0x3]  ;;  %v267_v5 = vmov 10   ;;  %vm143_vm1 = vcmask 1041408   ;;  %s268_s0 = smov [#allocation7]  }
  0x1c   :  { %179 = vmatprep.subr.mxu0 %v38_v2  ;;  %181 = vmatprep.mubr.msk.f32.mxu0 %vm51_vm0, %v39_v3  ;;  %s164_s1 = sshll.u32 %s268_s0, 4  ;;  %s165_s1 = int_to_ptr.vmem [resolvable:$true] %s164_s1 }
  0x1d   :  { %180 = vmatpush3.msra.mxu0 %v38_v2  ;;  %48 = vperm.xlu0 %192, %v40_v4   ;;  %s235_s21 = scalar_lea.vmem %s165_s1, 16  ;;  %s239_s22 = scalar_lea.vmem %s165_s1, 32 }
  0x1e   :  { %182 = vmatmul.mubr.msk.f32.vlgmr.msra.gmra.mxu0 %vm51_vm0, %v40_v4  ;;  %138 = vperm.xlu1 %193, %v40_v4   ;;  %p236_p10 = scmp.ne.s32.totalorder %s165_s1, %s235_s21  ;;  %p240_p11 = scmp.lt.s32.totalorder %s165_s1, %s165_s1 }
  0x1f   :  { %p241_p12 = scmp.lt.s32.totalorder %s239_s22, %s235_s21 }
  0x21   :  { %43 = vperm.xlu0 %192, %v39_v3   ;;  %p242_p13 = por %p241_p12, %p240_p11 }
  0x22   :  { %134 = vperm.xlu1 %193, %v39_v3  }
  0x23   :  { %p243_p0 = pnand %p242_p13, %p236_p10 }
  0x25   :  { %194 = vset.pattern.permute.xlu0 %v267_v5 }
  0x26   :  { %153 = vperm.xlu0 %194, %v39_v3  }
  0x98   :  { %v49_v6 = vpop.permute.xlu0 %48 }
  0x99   :  { %v139_v7 = vpop.permute.xlu1 %138 }
  0x9c   :  { %v44_v10 = vpop.permute.xlu0 %43 }
  0x9d   :  { %v135_v16 = vpop.permute.xlu1 %134 }
  0xa1   :  { %v154_v25 = vpop.permute.xlu0 %153 }
  0xde   :  { %v183_v8 = vpop.f32.mrf.mxu0 }
  0xdf   :  { %v128_v9 = vadd.f32 %v183_v8, %v49_v6 }
  0xe0   :  { %v122_v11 = vpop.f32.mrf.mxu0 }
  0xe1   :  { %v132_v12 = vmax.f32 %v128_v9, 0.0  ;;  %v123_v13 = vadd.f32 %v122_v11, %v44_v10 }
  0xe3   :  { %v142_v14 = vmul.f32 %v139_v7, %v132_v12  ;;  %v131_v15 = vmax.f32 %v123_v13, 0.0 }
  0xe5   :  { %v144_v17 = vsel %vm143_vm1, %v142_v14, 0.0  ;;  %v141_v18 = vmul.f32 %v135_v16, %v131_v15 }
  0xe7   :  { %v145_v19 = vadd.f32 %v144_v17, %v141_v18 }
  0xe9   :  { %v146_v20 = vrot.slane %v145_v19, 4 }
  0xeb   :  { %v147_v21 = vadd.f32 %v146_v20, %v145_v19 }
  0xed   :  { %v148_v22 = vrot.slane %v147_v21, 2 }
  0xef   :  { %v149_v23 = vadd.f32 %v148_v22, %v147_v21 }
  0xf1   :  { %v150_v24 = vrot.slane %v149_v23, 1 }
  0xf3   :  { %v151_v26 = vadd.f32 %v150_v24, %v149_v23 }
  0xf5   :  { %v156_v27 = vadd.f32 %v154_v25, %v151_v26 }
  0xf7   :  { %157 = vst [vmem:[#allocation7] sm:$0x1] %v156_v27 }
  0xf8   :  { %246 = shalt.err (!%p243_p0)
}
  0xf9   :  { %167 = dma.vmem_to_hbm [thread:$0]  %s165_s1, 16, %s295_s2, [#allocation4]  }
  0xfa   :  { %259 = dma.done.wait [#allocation4], 16  }
  0xfb   :  { %260 = vsyncadd [#allocation4], 4294967280 }
  0xfc   :  { %171 = vsyncpa [#allocation3], 1 }
  0xfd   :  { %172 = vsyncpa [#allocation6], 1 }
  0xfe   :  { %173 = vsyncpa [#allocation4], 1 }

</bundles_post_ra>
